<compile_context>
chip_gen: v7x
topology: tpu7x:2x2x1
jax: 0.10.0
libtpu: 0.0.40
codegen_flags: <defaults>
</compile_context>

<pallas_src>
import functools
import math

import jax
import jax.numpy as jnp
from jax import lax
from jax.experimental import pallas as pl
from jax.experimental.pallas import tpu as pltpu


_VMEM_LIMIT = 32 * 1024 * 1024  # raise v5e's 16 MiB default; <= v7x physical


def _row_tile(n, dtype, cap=512):
    """Row tile <= cap: full dim when it fits, else a sublane-pack multiple."""
    if n <= cap:
        return n
    pack = max(8, 32 // jnp.dtype(dtype).itemsize)  # 8 f32, 16 bf16, 32 int8
    return max(pack, (cap // pack) * pack)


# ---------------------------------------------------------------------------
# Fused, head-split projection: x @ W_g for every group g (q/k/v heads)
# ---------------------------------------------------------------------------

def _proj_kernel(x_ref, w_ref, o_ref):
    # x: (tn, d_in), w: (d_in, dh) -> o: (tn, dh); f32 accumulation on the MXU.
    o_ref[0, 0] = jnp.dot(
        x_ref[0], w_ref[0], preferred_element_type=jnp.float32
    ).astype(o_ref.dtype)


def project_heads(x3, w_h, *, tn=None):
    """x3: (B, N, d_in); w_h: (G, d_in, dh) -> (B, G, N, dh).

    The group axis is innermost, so the x tile's block index is unchanged
    across G steps and the activation is DMA'd from HBM once, while the small
    per-head weight column blocks stream (column tiling -> bounded VMEM)."""
    b, n, d_in = x3.shape
    g, _, dh = w_h.shape
    if tn is None:
        tn = _row_tile(n, x3.dtype)
    nt = pl.cdiv(n, tn)
    grid = (b, nt, g)

    itemsize = jnp.dtype(x3.dtype).itemsize
    cost = pl.CostEstimate(
        flops=2 * b * n * d_in * g * dh,
        transcendentals=0,
        bytes_accessed=(b * n * d_in              # activations: read once
                        + b * nt * g * d_in * dh  # weights: re-streamed / tile
                        + b * g * n * dh) * itemsize,
    )

    return pl.pallas_call(
        _proj_kernel,
        out_shape=jax.ShapeDtypeStruct((b, g, n, dh), x3.dtype),
        grid_spec=pltpu.PrefetchScalarGridSpec(
            num_scalar_prefetch=0,
            grid=grid,
            in_specs=[
                pl.BlockSpec((1, tn, d_in), lambda bi, i, gi: (bi, i, 0)),
                pl.BlockSpec((1, d_in, dh), lambda bi, i, gi: (gi, 0, 0)),
            ],
            out_specs=pl.BlockSpec((1, 1, tn, dh),
                                   lambda bi, i, gi: (bi, gi, i, 0)),
        ),
        compiler_params=pltpu.CompilerParams(
            dimension_semantics=("parallel", "parallel", "arbitrary"),
            vmem_limit_bytes=_VMEM_LIMIT),
        cost_estimate=cost,
    )(x3, w_h)


# ---------------------------------------------------------------------------
# Flash-style attention over head-split (B, G, N, dh) arrays
# ---------------------------------------------------------------------------

def _attn_kernel(q_ref, k_ref, v_ref, o_ref, m_sc, l_sc, acc_sc, *, nk, tk):
    ki = pl.program_id(3)
    nkt = pl.num_programs(3)

    @pl.when(ki == 0)
    def _():
        m_sc[...] = jnp.full_like(m_sc, -jnp.inf)
        l_sc[...] = jnp.zeros_like(l_sc)
        acc_sc[...] = jnp.zeros_like(acc_sc)

    q = q_ref[0, 0]   # (tq, dh); the softmax scale is already folded into wq
    k = k_ref[0, 0]   # (tk, dh)
    v = v_ref[0, 0]   # (tk, dh)

    # s = q @ k^T, accumulated in f32 on the MXU.
    s = lax.dot_general(q, k, (((1,), (1,)), ((), ())),
                        preferred_element_type=jnp.float32)

    if nk % tk != 0:  # static: only emitted when a padded last kv tile exists
        # Gate the padding mask behind lax.cond so the iota/where VPU work runs
        # only on the final kv step (also zero padded V rows for NaN safety).
        def _mask(ops):
            s_, v_ = ops
            col = ki * tk + lax.broadcasted_iota(jnp.int32, s_.shape, 1)
            s_ = jnp.where(col < nk, s_, -1e30)
            row = ki * tk + lax.broadcasted_iota(jnp.int32, v_.shape, 0)
            v_ = jnp.where(row < nk, v_, jnp.zeros_like(v_))
            return s_, v_
        s, v = lax.cond(ki == nkt - 1, _mask, lambda ops: ops, (s, v))

    # Online softmax.  (Padded rows of a partial last q tile compute on
    # garbage; results are per-row and clipped on the write, so harmless.)
    m_prev = m_sc[...]
    m_new = jnp.maximum(m_prev, s.max(axis=-1, keepdims=True))
    alpha = jnp.exp(m_prev - m_new)
    p = jnp.exp(s - m_new)           # EUP is the binding unit for dh=64 (v6e/v7x)
    l_sc[...] = alpha * l_sc[...] + p.sum(axis=-1, keepdims=True)
    acc_sc[...] = alpha * acc_sc[...] + jnp.dot(
        p.astype(v.dtype), v, preferred_element_type=jnp.float32)
    m_sc[...] = m_new

    @pl.when(ki == nkt - 1)
    def _():
        inv_l = pl.reciprocal(l_sc[...], approx=True)   # EUP slot, not a vdiv
        o_ref[0, 0] = (acc_sc[...] * inv_l).astype(o_ref.dtype)


def _head_slice_map(bi, h, i, j, *, off, kv):
    return (bi, h + off, j if kv else i, 0)


def attention_heads(q_arr, k_arr, v_arr, *, heads, q_off, k_off, v_off,
                    nq, nk, dh, tq=None, tk=None):
    """q/k/v arrays are (B, G, N, dh) (possibly the SAME array) holding the
    per-head projections at group offsets q_off / k_off / v_off."""
    b = q_arr.shape[0]
    if tq is None:
        tq = _row_tile(nq, q_arr.dtype)
    if tk is None:
        tk = _row_tile(nk, k_arr.dtype)   # small (<=512) contexts: one full tile
    nqt, nkt = pl.cdiv(nq, tq), pl.cdiv(nk, tk)
    grid = (b, heads, nqt, nkt)

    itemsize = jnp.dtype(q_arr.dtype).itemsize
    cost = pl.CostEstimate(
        flops=4 * b * heads * nq * nk * dh,
        transcendentals=b * heads * nq * nk,
        bytes_accessed=(b * heads * nq * dh               # q (once per tile)
                        + 2 * b * heads * nqt * nk * dh   # k,v re-read / q tile
                        + b * heads * nq * dh) * itemsize)

    kernel = functools.partial(_attn_kernel, nk=nk, tk=tk)

    return pl.pallas_call(
        kernel,
        out_shape=jax.ShapeDtypeStruct((b, heads, nq, dh), q_arr.dtype),
        grid_spec=pltpu.PrefetchScalarGridSpec(
            num_scalar_prefetch=0,
            grid=grid,
            in_specs=[
                pl.BlockSpec((1, 1, tq, dh),
                             functools.partial(_head_slice_map, off=q_off, kv=False)),
                pl.BlockSpec((1, 1, tk, dh),
                             functools.partial(_head_slice_map, off=k_off, kv=True)),
                pl.BlockSpec((1, 1, tk, dh),
                             functools.partial(_head_slice_map, off=v_off, kv=True)),
            ],
            out_specs=pl.BlockSpec((1, 1, tq, dh),
                                   lambda bi, h, i, j: (bi, h, i, 0)),
            scratch_shapes=[
                pltpu.VMEM((tq, 1), jnp.float32),    # running max
                pltpu.VMEM((tq, 1), jnp.float32),    # running sum
                pltpu.VMEM((tq, dh), jnp.float32),   # output accumulator
            ],
        ),
        compiler_params=pltpu.CompilerParams(
            dimension_semantics=("parallel", "parallel", "parallel", "arbitrary"),
            vmem_limit_bytes=_VMEM_LIMIT),
        cost_estimate=cost,
    )(q_arr, k_arr, v_arr)


# ---------------------------------------------------------------------------
# to_out projection with the head merge folded in (grouped matmul over heads)
# ---------------------------------------------------------------------------

def _out_proj_kernel(x_ref, w_ref, b_ref, o_ref, acc_ref):
    h = pl.program_id(2)

    @pl.when(h == 0)
    def _():  # initialize the accumulator with the bias (runs once per tile)
        acc_ref[...] = jnp.broadcast_to(
            b_ref[...].astype(jnp.float32), acc_ref.shape)

    acc_ref[...] += jnp.dot(x_ref[0, 0], w_ref[0],
                            preferred_element_type=jnp.float32)

    @pl.when(h == pl.num_programs(2) - 1)
    def _():
        o_ref[0] = acc_ref[...].astype(o_ref.dtype)


def out_projection(attn, w_h, bias, *, tq=None):
    """attn: (B, H, Nq, dh); w_h: (H, dh, d_out); bias: (d_out,) -> (B, Nq, d_out).
    Heads are the 'arbitrary' reduction axis, so the 'b h n d -> b n (h d)'
    merge never materializes as an XLA transpose."""
    b, heads, nq, dh = attn.shape
    d_out = w_h.shape[-1]
    if tq is None:
        tq = _row_tile(nq, attn.dtype)
    nqt = pl.cdiv(nq, tq)
    grid = (b, nqt, heads)

    itemsize = jnp.dtype(attn.dtype).itemsize
    cost = pl.CostEstimate(
        flops=2 * b * nq * heads * dh * d_out,
        transcendentals=0,
        bytes_accessed=(b * heads * nq * dh
                        + b * nqt * heads * dh * d_out
                        + d_out + b * nq * d_out) * itemsize)

    return pl.pallas_call(
        _out_proj_kernel,
        out_shape=jax.ShapeDtypeStruct((b, nq, d_out), attn.dtype),
        grid_spec=pltpu.PrefetchScalarGridSpec(
            num_scalar_prefetch=0,
            grid=grid,
            in_specs=[
                pl.BlockSpec((1, 1, tq, dh), lambda bi, i, h: (bi, h, i, 0)),
                pl.BlockSpec((1, dh, d_out), lambda bi, i, h: (h, 0, 0)),
                pl.BlockSpec((1, d_out), lambda bi, i, h: (0, 0)),
            ],
            out_specs=pl.BlockSpec((1, tq, d_out), lambda bi, i, h: (bi, i, 0)),
            scratch_shapes=[pltpu.VMEM((tq, d_out), jnp.float32)],
        ),
        compiler_params=pltpu.CompilerParams(
            dimension_semantics=("parallel", "parallel", "arbitrary"),
            vmem_limit_bytes=_VMEM_LIMIT),
        cost_estimate=cost,
    )(attn, w_h, bias.reshape(1, d_out))


# ---------------------------------------------------------------------------
# CrossAttention forward
# ---------------------------------------------------------------------------

def _split_w_heads(w, heads):
    # (d_in, H*dh) -> (H, d_in, dh): one-time, weight-sized re-layout outside
    # the kernels.  Activations never go through an XLA transpose.
    d_in, inner = w.shape
    dh = inner // heads
    return w.reshape(d_in, heads, dh).transpose(1, 0, 2)


def cross_attention_pallas(x, context, params, *, heads):
    """x: (B, Nq, query_dim); context: (B, Nk, context_dim) or None.
    The module's `mask` arg is unused in the reference forward; Dropout(0.0)
    in to_out is an identity."""
    wq, wk, wv, wo, bo = params
    b, nq, _ = x.shape
    inner = wq.shape[1]
    dh = inner // heads
    scale = dh ** (-0.5)

    # Fold the attention scale into the Q weight: q' = x @ (wq*scale), so the
    # attention kernel never spends per-step VPU work scaling the score tile.
    wq_h = _split_w_heads(wq * scale, heads)          # (H, d_q,  dh)
    wk_h = _split_w_heads(wk, heads)                  # (H, d_c,  dh)
    wv_h = _split_w_heads(wv, heads)                  # (H, d_c,  dh)
    wo_h = wo.reshape(heads, dh, wo.shape[1])         # (H, dh, d_q); '(h d)' row order

    if context is None:
        # Self-attention: fused Q|K|V projection, activations read from HBM once.
        w_all = jnp.concatenate([wq_h, wk_h, wv_h], axis=0)   # (3H, d_q, dh)
        qkv = project_heads(x, w_all)                          # (B, 3H, Nq, dh)
        attn = attention_heads(qkv, qkv, qkv, heads=heads,
                               q_off=0, k_off=heads, v_off=2 * heads,
                               nq=nq, nk=nq, dh=dh)
    else:
        nk = context.shape[1]
        q = project_heads(x, wq_h)                             # (B,  H, Nq, dh)
        w_kv = jnp.concatenate([wk_h, wv_h], axis=0)           # (2H, d_c, dh)
        kv = project_heads(context, w_kv)                      # (B, 2H, Nk, dh)
        attn = attention_heads(q, kv, kv, heads=heads,
                               q_off=0, k_off=0, v_off=heads,
                               nq=nq, nk=nk, dh=dh)

    # to_out = Linear(inner, query_dim) (+ Dropout(0.0) == identity).
    return out_projection(attn, wo_h, bo)


# ---------------------------------------------------------------------------
# Parameter init (mimics nn.Linear uniform(+/- 1/sqrt(fan_in))) and reference
# ---------------------------------------------------------------------------

def init_cross_attention_params(key, query_dim, context_dim=None, heads=8,
                                dim_head=64, dtype=jnp.float32):
    inner = heads * dim_head
    if context_dim is None:
        context_dim = query_dim
    kq, kk, kv, ko, kb = jax.random.split(key, 5)
    bq = 1.0 / math.sqrt(query_dim)
    bc = 1.0 / math.sqrt(context_dim)
    bi = 1.0 / math.sqrt(inner)
    wq = jax.random.uniform(kq, (query_dim, inner), dtype, -bq, bq)
    wk = jax.random.uniform(kk, (context_dim, inner), dtype, -bc, bc)
    wv = jax.random.uniform(kv, (context_dim, inner), dtype, -bc, bc)
    wo = jax.random.uniform(ko, (inner, query_dim), dtype, -bi, bi)
    bo = jax.random.uniform(kb, (query_dim,), dtype, -bi, bi)
    return wq, wk, wv, wo, bo


def cross_attention_reference(x, context, params, *, heads):
    wq, wk, wv, wo, bo = params
    ctx = x if context is None else context
    q, k, v = x @ wq, ctx @ wk, ctx @ wv
    b, nq, inner = q.shape
    dh = inner // heads
    scale = dh ** (-0.5)

    def split(t):  # 'b n (h d) -> (b h) n d'
        bb, n, _ = t.shape
        return t.reshape(bb, n, heads, dh).transpose(0, 2, 1, 3).reshape(
            bb * heads, n, dh)

    qh, kh, vh = split(q), split(k), split(v)
    sim = jnp.einsum('bid,bjd->bij', qh, kh) * scale
    attn = jax.nn.softmax(sim, axis=-1)
    out = jnp.einsum('bij,bjd->bid', attn, vh)
    out = out.reshape(b, heads, nq, dh).transpose(0, 2, 1, 3).reshape(
        b, nq, inner)
    return out @ wo + bo


if __name__ == "__main__":
    key = jax.random.PRNGKey(0)
    kx, kc, kp = jax.random.split(key, 3)

    # Small shapes consistent with the module: batch=2, seq=8, query_dim=32,
    # heads=4, dim_head=8 (inner_dim=32), cross-context seq=16.
    B, N_Q, N_KV = 2, 8, 16
    QUERY_DIM, CONTEXT_DIM = 32, 32
    HEADS, DIM_HEAD = 4, 8

    x = jax.random.normal(kx, (B, N_Q, QUERY_DIM), jnp.float32)
    context = jax.random.normal(kc, (B, N_KV, CONTEXT_DIM), jnp.float32)
    params = init_cross_attention_params(
        kp, QUERY_DIM, CONTEXT_DIM, heads=HEADS, dim_head=DIM_HEAD)

    # Self-attention path (context=None), the module's default.
    out_self = jax.block_until_ready(
        cross_attention_pallas(x, None, params, heads=HEADS))
    ref_self = cross_attention_reference(x, None, params, heads=HEADS)
    assert out_self.shape == (B, N_Q, QUERY_DIM), out_self.shape
    assert jnp.allclose(out_self, ref_self, atol=2e-3, rtol=2e-3), (
        float(jnp.max(jnp.abs(out_self - ref_self))))

    # Cross-attention path with an explicit context.
    out_cross = jax.block_until_ready(
        cross_attention_pallas(x, context, params, heads=HEADS))
    ref_cross = cross_attention_reference(x, context, params, heads=HEADS)
    assert out_cross.shape == (B, N_Q, QUERY_DIM), out_cross.shape
    assert jnp.allclose(out_cross, ref_cross, atol=2e-3, rtol=2e-3), (
        float(jnp.max(jnp.abs(out_cross - ref_cross))))

    print("KERNEL_OK")
</pallas_src>

<mosaic_0001>
module attributes {stable_mosaic.version = 11 : i64} {
  func.func @_proj_kernel(%arg0: i32, %arg1: i32, %arg2: i32, %arg3: memref<1x8x32xf32, #tpu.memory_space<vmem>>, %arg4: memref<1x32x8xf32, #tpu.memory_space<vmem>>, %arg5: memref<1x1x8x8xf32, #tpu.memory_space<vmem>>) attributes {dimension_semantics = [#tpu.dimension_semantics<parallel>, #tpu.dimension_semantics<parallel>, #tpu.dimension_semantics<arbitrary>], iteration_bounds = array<i64: 2, 1, 12>, scalar_prefetch = 0 : i64, scratch_operands = 0 : i64, tpu.core_type = #tpu.core_type<tc>, window_params = [{transform_indices = @transform_0, window_bounds = array<i64: 1, 8, 32>}, {transform_indices = @transform_1, window_bounds = array<i64: 1, 32, 8>}, {transform_indices = @transform_2, window_bounds = array<i64: 1, 1, 8, 8>}]} {
    %c0 = arith.constant 0 : index
    %c0_0 = arith.constant 0 : index
    %c0_1 = arith.constant 0 : index
    %0 = vector.load %arg3[%c0, %c0_0, %c0_1] : memref<1x8x32xf32, #tpu.memory_space<vmem>>, vector<1x8x32xf32>
    %1 = vector.shape_cast %0 : vector<1x8x32xf32> to vector<8x32xf32>
    %c0_2 = arith.constant 0 : index
    %c0_3 = arith.constant 0 : index
    %c0_4 = arith.constant 0 : index
    %2 = vector.load %arg4[%c0_2, %c0_3, %c0_4] : memref<1x32x8xf32, #tpu.memory_space<vmem>>, vector<1x32x8xf32>
    %3 = vector.shape_cast %2 : vector<1x32x8xf32> to vector<32x8xf32>
    %cst = arith.constant dense<0.000000e+00> : vector<8x8xf32>
    %4 = tpu.matmul %1, %3, %cst {dimension_numbers = #tpu.dot_dimension_numbers<[1], [0], [0], [1], [0, 0, 1, 1], [], []>} : vector<8x32xf32>, vector<32x8xf32>, vector<8x8xf32> -> vector<8x8xf32>
    %c0_5 = arith.constant 0 : index
    %c0_6 = arith.constant 0 : index
    %c0_7 = arith.constant 0 : index
    %c0_8 = arith.constant 0 : index
    %5 = vector.load %arg5[%c0_5, %c0_6, %c0_7, %c0_8] : memref<1x1x8x8xf32, #tpu.memory_space<vmem>>, vector<1x1x8x8xf32>
    %6 = vector.shape_cast %5 : vector<1x1x8x8xf32> to vector<8x8xf32>
    %7 = vector.shape_cast %4 : vector<8x8xf32> to vector<1x1x8x8xf32>
    tpu.vector_store %arg5[%c0_5, %c0_6, %c0_7, %c0_8], %7 {strides = array<i32>} : memref<1x1x8x8xf32, #tpu.memory_space<vmem>>, vector<1x1x8x8xf32>,
    return
  }
  func.func @transform_0(%arg0: i32, %arg1: i32, %arg2: i32) -> (i32, i32, i32) {
    %c0_i32 = arith.constant 0 : i32
    %c0_i32_0 = arith.constant 0 : i32
    return %arg0, %arg1, %c0_i32 : i32, i32, i32
  }
  func.func @transform_1(%arg0: i32, %arg1: i32, %arg2: i32) -> (i32, i32, i32) {
    %c0_i32 = arith.constant 0 : i32
    %c0_i32_0 = arith.constant 0 : i32
    %c0_i32_1 = arith.constant 0 : i32
    return %arg2, %c0_i32, %c0_i32_0 : i32, i32, i32
  }
  func.func @transform_2(%arg0: i32, %arg1: i32, %arg2: i32) -> (i32, i32, i32, i32) {
    %c0_i32 = arith.constant 0 : i32
    %c0_i32_0 = arith.constant 0 : i32
    return %arg0, %arg2, %arg1, %c0_i32 : i32, i32, i32, i32
  }
}

</mosaic_0001>

<bundles_post_ra>
// kernel: tpu_custom_call.1
= control target key start
LH: loop header
LB: loop body
LE: loop exit
PB: predicated region body
PF: predicated region fallthrough
CT: control target
= control target key end

     0   :  { %s533_s9 = smov 0   ;;  %s535_s10 = smov 0   ;;  %s587_s0 = inlined_call_operand.vmem [shape: f32[2,8,32], index: 0, kind: input, shape index: {}]   ;;  %s588_s1 = inlined_call_operand.vmem [shape: f32[12,32,8], index: 1, kind: input, shape index: {}]   ;;  %s589_s2 = inlined_call_operand.vmem [shape: f32[2,12,8,8], index: 2, kind: output, shape index: {}]  }
   0x1   :  { %s537_s11 = smov 0   ;;  %s539_s12 = smov 0  }
   0x2   :  { %s541_s13 = smov 0  }
   0x3 LB: > { %s24_s14 = sadd.s32 1, %s505_s11  ;;  %s31_s15 = sadd.s32 1, %s509_s12  ;;  %s513_s13 = sphi %s541_s13, %s12_s13   ;;  %s509_s12 = sphi %s539_s12, %s593_s12   ;;  %s505_s11 = sphi %s537_s11, %s592_s11   ;;  %s501_s10 = sphi %s535_s10, %s591_s10   ;;  %s497_s9 = sphi %s533_s9, %s590_s9  }
   0x4   : > { %p25_p0 = scmp.ge.s32.totalorder %s24_s14, 12  ;;  %p400_p1 = scmp.ge.s32.totalorder %s513_s13, 1 }
   0x5   : > { %p149_p2 = scmp.lt.s32.totalorder %s513_s13, 25 }
   0x6   : > { %s595_s14 = smov (%p25_p0, %s24_s14), 0  ;;  %s597_s15 = smov (!%p25_p0, %s31_s15), %s509_s12 }
   0x7   : > { %p150_p3 = pnand %p400_p1, %p149_p2  ;;  %p33_p4 = scmp.ge.s32.totalorder %s597_s15, 2 }
   0x8   : > { %p191_p5 = scmp.lt.s32.totalorder (!%p150_p3), %s497_s9, 11  ;;  %p184_p6 = scmp.lt.s32.totalorder (!%p150_p3), %s501_s10, 1  ;;  %v515_v0 = vmov (!%p150_p3), 0.0|0.0   ;;  %vm516_vm0 = vmmov (!%p150_p3), 0   ;;  %v517_v1 = vmov (!%p150_p3), 0.0   ;;  %vm212_vm1 = vcmask (!%p150_p3), 261120  }
   0x9   : > { %s599_s15 = smov (%p33_p4, %s597_s15), 0  ;;  %153 = sbr.rel (%p150_p3) target bundleno = 242 (0xf2), region = 28 }
   0xa   : > { %425 = vmatprep.subr.bf16.mxu0 (!%p150_p3), %v515_v0  ;;  %422 = vmatprep.mubr.msk.f32.mxu0 (!%p150_p3), %vm516_vm0, %v517_v1  ;;  %vm286_vm2 = vcmask (!%p150_p3), 64512  }
  0x10   : > { %s601_s9 = smov (!%p191_p5, %s497_s9), 11  ;;  %s603_s10 = smov (!%p184_p6, %s501_s10), 1 }
  0x11   : > { %s408_s16 = sshll.u32 %s601_s9, 5  ;;  %s431_s20 = smul.u32 12, %s603_s10 }
  0x12   : > { %s195_s19 = scalar_lea.vmem %s588_s1, %s408_s16  ;;  %s401_s21 = sshll.u32 %s603_s10, 3 }
  0x13   : > { %v208_v2 = vld [vmem:[%s195_s19] sm:$0xff]  ;;  %v209_v3 = vld [vmem:[%s195_s19 + $0x8] sm:$0xff]  ;;  %v210_v4 = vld [vmem:[%s195_s19 + $0x10] sm:$0xff]  ;;  %s204_s22 = sadd.s32 %s431_s20, %s601_s9  ;;  %s190_s25 = scalar_lea.vmem %s587_s0, %s401_s21 }
  0x14   : > { %v426_v5 = vpack.c.bf16 %v209_v3, %v208_v2  ;;  %v211_v6 = vld [vmem:[%s195_s19 + $0x18] sm:$0xff]  ;;  %v207_v8 = vld [vmem:[%s190_s25] sm:$0xff]  ;;  %s404_s26 = sshll.u32 %s204_s22, 3 }
  0x15   : > { %v429_v7 = vpack.c.bf16 %v211_v6, %v210_v4  ;;  %s206_s29 = scalar_lea.vmem %s589_s2, %s404_s26 }
  0x16   : > { %427 = vmatpush3.bf16.msra.mxu0 %v426_v5 }
  0x17   : > { %428 = vmatprep.subr.bf16.mxu0 %v515_v0 }
  0x1a   : > { %430 = vmatpush3.bf16.msra.mxu0 %v429_v7 }
  0x1d   : > { %423 = vmatmul.mubr.msk.f32.vlgmr.msra.gmra.mrb[0].mxu0 %vm212_vm1, %v207_v8 }
  0xf0   : > { %v282_v9 = vpop.f32.mrb[0].mxu0 }
  0xf1   : > { %287 = vst.msk [vmem:[%s206_s29] sm:$0xff] %vm286_vm2, %v282_v9  ;;  %v424_v10 = vpop.f32.mrb[1].mxu0 }
  0xf2 PF: > { %s12_s13 = sadd.s32 1, %s513_s13   ;;  %s590_s9 = smov %s505_s11 }
  0xf3   : > { %p9_p7 = scmp.ge.s32.totalorder %s12_s13, 26   ;;  %s591_s10 = smov %s509_s12 }
  0xf4   : > { %s592_s11 = smov %s595_s14  ;;  %s593_s12 = smov %s599_s15 }
  0xf5   :  { %11 = sbr.rel (!%p9_p7) target bundleno = 3 (0x3), region = 61 }

</bundles_post_ra>
